<compile_context>
chip_gen: v7x
topology: tpu7x:2x2x1
jax: 0.10.0
libtpu: 0.0.40
codegen_flags: <defaults>
</compile_context>

<pallas_src>
import jax
import jax.numpy as jnp
from jax.experimental import pallas as pl
from jax.experimental.pallas import tpu as pltpu


def _round_up(a, b):
    return (a + b - 1) // b * b


def player_rating_kernel(x_ref, gw_ref, w1_ref, b1_ref, w2_ref, b2_ref, w3_ref,
                         b3_ref, o_ref):
    """One grid step: tile_n (batch,player) groups, all G games; lanes = groups."""
    g_games = x_ref.shape[0]
    tile_n = x_ref.shape[-1]

    # Weights/biases are tiny and resident in VMEM (constant index_map).
    w1 = w1_ref[...]        # (16, 20) bf16
    b1 = b1_ref[...]        # (16, 1)  f32
    w2 = w2_ref[...]        # (12, 16) bf16
    b2 = b2_ref[...]        # (12, 1)  f32
    w3 = w3_ref[...]        # (4, 12)  bf16
    b3 = b3_ref[...]        # (4, 1)   f32
    gw = gw_ref[...]        # (G, 1, tile_n) f32

    num = jnp.zeros((o_ref.shape[0], tile_n), jnp.float32)
    # Short static unroll over games: leading-axis accumulation on the VPU,
    # no relayout regardless of G.
    for g in range(g_games):
        x = x_ref[g]                                                   # (F, tile_n) bf16
        h = jnp.dot(w1, x, preferred_element_type=jnp.float32) + b1    # (16, tile_n) f32
        h = jnp.maximum(h, 0.0).astype(jnp.bfloat16)
        h = jnp.dot(w2, h, preferred_element_type=jnp.float32) + b2    # (12, tile_n) f32
        h = jnp.maximum(h, 0.0).astype(jnp.bfloat16)
        h = jnp.dot(w3, h, preferred_element_type=jnp.float32) + b3    # (4, tile_n)  f32
        h = jnp.maximum(h, 0.0)
        num = num + h * gw[g]                        # (1, tile_n) sublane-broadcast

    den = jnp.sum(gw, axis=0) + 0.001                # (1, tile_n) f32
    # Exact reciprocal (the divide is negligible work; keeps tight agreement).
    o_ref[...] = num * pl.reciprocal(den, approx=False)


def init_params(key):
    """Deterministic init matching nn.Linear: weights (out, in), biases (out, 1)."""
    ks = jax.random.split(key, 6)

    def lin(kw, kb, fin, fout):
        bound = 1.0 / jnp.sqrt(jnp.float32(fin))
        w = jax.random.uniform(kw, (fout, fin), jnp.float32, -bound, bound)
        b = jax.random.uniform(kb, (fout, 1), jnp.float32, -bound, bound)
        return w, b

    w1, b1 = lin(ks[0], ks[1], 20, 16)
    w2, b2 = lin(ks[2], ks[3], 16, 12)
    w3, b3 = lin(ks[4], ks[5], 12, 4)
    return (w1, b1, w2, b2, w3, b3)


def player_rating_forward(player_stats, game_weight, params, *, tile_groups=2048):
    """player_stats: (B,P,G,20) f32, game_weight: (B,P,G) f32  ->  (B,P,4) f32."""
    B, P, G, F = player_stats.shape
    N = B * P
    w1, b1, w2, b2, w3, b3 = params

    # Feature-major bf16 layout: (G, F, N) with groups in lanes.  game_weight stays
    # a separate, exact f32 operand (G, 1, N).
    # TODO(synk): in production, emit this (G, F, N) bf16 layout directly from the
    # upstream producer so the transpose does not re-stream the stats through HBM.
    x_t = jnp.transpose(player_stats.reshape(N, G, F), (1, 2, 0)).astype(jnp.bfloat16)
    gw_t = jnp.transpose(game_weight.reshape(N, G), (1, 0))[:, None, :]

    # tile_n groups per grid step, lane-dense (multiple of 128).  Per-tile footprint
    # at 2048 groups is ~6 MiB (bf16 input + f32 intermediates), double-buffered.
    tile_n = min(tile_groups, _round_up(N, 128))
    n_pad = _round_up(N, tile_n)
    if n_pad != N:
        # Padded groups have gw = 0 -> num = 0, den = 0.001 -> output 0, sliced away.
        x_t = jnp.pad(x_t, ((0, 0), (0, 0), (0, n_pad - N)))
        gw_t = jnp.pad(gw_t, ((0, 0), (0, 0), (0, n_pad - N)))
    grid = (n_pad // tile_n,)

    # True bf16 weights for the MXU (f32 accumulation happens in-kernel).
    w1b, w2b, w3b = (w.astype(jnp.bfloat16) for w in (w1, w2, w3))

    const2 = lambda i: (0, 0)
    out = pl.pallas_call(
        player_rating_kernel,
        out_shape=jax.ShapeDtypeStruct((4, n_pad), jnp.float32),
        grid=grid,
        in_specs=[
            pl.BlockSpec((G, F, tile_n), lambda i: (0, 0, i)),
            pl.BlockSpec((G, 1, tile_n), lambda i: (0, 0, i)),
            pl.BlockSpec(w1b.shape, const2),
            pl.BlockSpec(b1.shape, const2),
            pl.BlockSpec(w2b.shape, const2),
            pl.BlockSpec(b2.shape, const2),
            pl.BlockSpec(w3b.shape, const2),
            pl.BlockSpec(b3.shape, const2),
        ],
        out_specs=pl.BlockSpec((4, tile_n), lambda i: (0, i)),
        compiler_params=pltpu.CompilerParams(
            dimension_semantics=("parallel",),     # tiles independent
            vmem_limit_bytes=48 * 1024 * 1024,     # <= v7x physical; room on v5e/v6e
        ),
    )(x_t, gw_t, w1b, b1, w2b, b2, w3b, b3)

    return out[:, :N].T.reshape(B, P, 4)


if __name__ == "__main__":
    key = jax.random.PRNGKey(0)
    kp, kx, kw = jax.random.split(key, 3)
    B, P, G, F = 2, 4, 8, 20  # batch, players, games, features
    params = init_params(kp)
    player_stats = jax.random.normal(kx, (B, P, G, F), jnp.float32)
    game_weight = jax.random.uniform(kw, (B, P, G), jnp.float32)

    fwd = jax.jit(player_rating_forward)
    out = jax.block_until_ready(fwd(player_stats, game_weight, params))

    # Pure-JAX reference emulating the kernel's bf16 rounding of weights, streamed
    # stats and inter-layer activations (f32 accumulation, like the MXU).
    w1, b1, w2, b2, w3, b3 = params
    bf = lambda a: a.astype(jnp.bfloat16).astype(jnp.float32)
    h = jnp.maximum(bf(player_stats) @ bf(w1).T + b1[:, 0], 0.0)
    h = jnp.maximum(bf(h) @ bf(w2).T + b2[:, 0], 0.0)
    h = jnp.maximum(bf(h) @ bf(w3).T + b3[:, 0], 0.0)
    num = jnp.sum(h * game_weight[..., None], axis=2)
    den = jnp.sum(game_weight, axis=2)[..., None] + 0.001
    ref = num / den

    assert out.shape == (B, P, 4)
    max_err = float(jnp.max(jnp.abs(out - ref)))
    assert jnp.allclose(out, ref, atol=1e-3, rtol=1e-3), max_err
    print("KERNEL_OK")
</pallas_src>

<mosaic_0001>
module attributes {stable_mosaic.version = 11 : i64} {
  func.func @player_rating_kernel(%arg0: i32, %arg1: memref<8x20x128xbf16, #tpu.memory_space<vmem>>, %arg2: memref<8x1x128xf32, #tpu.memory_space<vmem>>, %arg3: memref<16x20xbf16, #tpu.memory_space<vmem>>, %arg4: memref<16x1xf32, #tpu.memory_space<vmem>>, %arg5: memref<12x16xbf16, #tpu.memory_space<vmem>>, %arg6: memref<12x1xf32, #tpu.memory_space<vmem>>, %arg7: memref<4x12xbf16, #tpu.memory_space<vmem>>, %arg8: memref<4x1xf32, #tpu.memory_space<vmem>>, %arg9: memref<4x128xf32, #tpu.memory_space<vmem>>) attributes {dimension_semantics = [#tpu.dimension_semantics<parallel>], iteration_bounds = array<i64: 1>, scalar_prefetch = 0 : i64, scratch_operands = 0 : i64, tpu.core_type = #tpu.core_type<tc>, window_params = [{transform_indices = @transform_0, window_bounds = array<i64: 8, 20, 128>}, {transform_indices = @transform_1, window_bounds = array<i64: 8, 1, 128>}, {pipeline_mode = #tpu.pipeline_mode<synchronous>, transform_indices = @transform_2, window_bounds = array<i64: 16, 20>}, {pipeline_mode = #tpu.pipeline_mode<synchronous>, transform_indices = @transform_3, window_bounds = array<i64: 16, 1>}, {pipeline_mode = #tpu.pipeline_mode<synchronous>, transform_indices = @transform_4, window_bounds = array<i64: 12, 16>}, {pipeline_mode = #tpu.pipeline_mode<synchronous>, transform_indices = @transform_5, window_bounds = array<i64: 12, 1>}, {pipeline_mode = #tpu.pipeline_mode<synchronous>, transform_indices = @transform_6, window_bounds = array<i64: 4, 12>}, {pipeline_mode = #tpu.pipeline_mode<synchronous>, transform_indices = @transform_7, window_bounds = array<i64: 4, 1>}, {transform_indices = @transform_8, window_bounds = array<i64: 4, 128>}]} {
    %c0 = arith.constant 0 : index
    %c0_0 = arith.constant 0 : index
    %0 = vector.load %arg3[%c0, %c0_0] : memref<16x20xbf16, #tpu.memory_space<vmem>>, vector<16x20xbf16>
    %c0_1 = arith.constant 0 : index
    %c0_2 = arith.constant 0 : index
    %1 = vector.load %arg4[%c0_1, %c0_2] : memref<16x1xf32, #tpu.memory_space<vmem>>, vector<16x1xf32>
    %c0_3 = arith.constant 0 : index
    %c0_4 = arith.constant 0 : index
    %2 = vector.load %arg5[%c0_3, %c0_4] : memref<12x16xbf16, #tpu.memory_space<vmem>>, vector<12x16xbf16>
    %c0_5 = arith.constant 0 : index
    %c0_6 = arith.constant 0 : index
    %3 = vector.load %arg6[%c0_5, %c0_6] : memref<12x1xf32, #tpu.memory_space<vmem>>, vector<12x1xf32>
    %c0_7 = arith.constant 0 : index
    %c0_8 = arith.constant 0 : index
    %4 = vector.load %arg7[%c0_7, %c0_8] : memref<4x12xbf16, #tpu.memory_space<vmem>>, vector<4x12xbf16>
    %c0_9 = arith.constant 0 : index
    %c0_10 = arith.constant 0 : index
    %5 = vector.load %arg8[%c0_9, %c0_10] : memref<4x1xf32, #tpu.memory_space<vmem>>, vector<4x1xf32>
    %c0_11 = arith.constant 0 : index
    %c0_12 = arith.constant 0 : index
    %c0_13 = arith.constant 0 : index
    %6 = vector.load %arg2[%c0_11, %c0_12, %c0_13] : memref<8x1x128xf32, #tpu.memory_space<vmem>>, vector<8x1x128xf32>
    %cst = arith.constant 0.000000e+00 : f32
    %7 = vector.broadcast %cst : f32 to vector<4x128xf32>
    %c0_14 = arith.constant 0 : index
    %c0_15 = arith.constant 0 : index
    %c0_16 = arith.constant 0 : index
    %8 = vector.load %arg1[%c0_14, %c0_15, %c0_16] : memref<8x20x128xbf16, #tpu.memory_space<vmem>>, vector<1x20x128xbf16>
    %9 = vector.shape_cast %8 : vector<1x20x128xbf16> to vector<20x128xbf16>
    %cst_17 = arith.constant dense<0.000000e+00> : vector<16x128xf32>
    %10 = tpu.matmul %0, %9, %cst_17 {dimension_numbers = #tpu.dot_dimension_numbers<[1], [0], [0], [1], [0, 0, 1, 1], [], []>} : vector<16x20xbf16>, vector<20x128xbf16>, vector<16x128xf32> -> vector<16x128xf32>
    %11 = vector.broadcast %1 : vector<16x1xf32> to vector<16x128xf32>
    %12 = arith.addf %10, %11 : vector<16x128xf32>
    %cst_18 = arith.constant 0.000000e+00 : f32
    %13 = vector.broadcast %cst_18 : f32 to vector<16x128xf32>
    %14 = arith.maximumf %12, %13 : vector<16x128xf32>
    %15 = arith.truncf %14 : vector<16x128xf32> to vector<16x128xbf16>
    %cst_19 = arith.constant dense<0.000000e+00> : vector<12x128xf32>
    %16 = tpu.matmul %2, %15, %cst_19 {dimension_numbers = #tpu.dot_dimension_numbers<[1], [0], [0], [1], [0, 0, 1, 1], [], []>} : vector<12x16xbf16>, vector<16x128xbf16>, vector<12x128xf32> -> vector<12x128xf32>
    %17 = vector.broadcast %3 : vector<12x1xf32> to vector<12x128xf32>
    %18 = arith.addf %16, %17 : vector<12x128xf32>
    %cst_20 = arith.constant 0.000000e+00 : f32
    %19 = vector.broadcast %cst_20 : f32 to vector<12x128xf32>
    %20 = arith.maximumf %18, %19 : vector<12x128xf32>
    %21 = arith.truncf %20 : vector<12x128xf32> to vector<12x128xbf16>
    %cst_21 = arith.constant dense<0.000000e+00> : vector<4x128xf32>
    %22 = tpu.matmul %4, %21, %cst_21 {dimension_numbers = #tpu.dot_dimension_numbers<[1], [0], [0], [1], [0, 0, 1, 1], [], []>} : vector<4x12xbf16>, vector<12x128xbf16>, vector<4x128xf32> -> vector<4x128xf32>
    %23 = vector.broadcast %5 : vector<4x1xf32> to vector<4x128xf32>
    %24 = arith.addf %22, %23 : vector<4x128xf32>
    %cst_22 = arith.constant 0.000000e+00 : f32
    %25 = vector.broadcast %cst_22 : f32 to vector<4x128xf32>
    %26 = arith.maximumf %24, %25 : vector<4x128xf32>
    %27 = vector.extract_strided_slice %6 {offsets = [0, 0, 0], sizes = [1, 1, 128], strides = [1, 1, 1]} : vector<8x1x128xf32> to vector<1x1x128xf32>
    %28 = vector.shape_cast %27 : vector<1x1x128xf32> to vector<1x128xf32>
    %29 = vector.broadcast %28 : vector<1x128xf32> to vector<4x128xf32>
    %30 = arith.mulf %26, %29 : vector<4x128xf32>
    %31 = arith.addf %7, %30 : vector<4x128xf32>
    %c1 = arith.constant 1 : index
    %c0_23 = arith.constant 0 : index
    %c0_24 = arith.constant 0 : index
    %32 = vector.load %arg1[%c1, %c0_23, %c0_24] : memref<8x20x128xbf16, #tpu.memory_space<vmem>>, vector<1x20x128xbf16>
    %33 = vector.shape_cast %32 : vector<1x20x128xbf16> to vector<20x128xbf16>
    %cst_25 = arith.constant dense<0.000000e+00> : vector<16x128xf32>
    %34 = tpu.matmul %0, %33, %cst_25 {dimension_numbers = #tpu.dot_dimension_numbers<[1], [0], [0], [1], [0, 0, 1, 1], [], []>} : vector<16x20xbf16>, vector<20x128xbf16>, vector<16x128xf32> -> vector<16x128xf32>
    %35 = vector.broadcast %1 : vector<16x1xf32> to vector<16x128xf32>
    %36 = arith.addf %34, %35 : vector<16x128xf32>
    %cst_26 = arith.constant 0.000000e+00 : f32
    %37 = vector.broadcast %cst_26 : f32 to vector<16x128xf32>
    %38 = arith.maximumf %36, %37 : vector<16x128xf32>
    %39 = arith.truncf %38 : vector<16x128xf32> to vector<16x128xbf16>
    %cst_27 = arith.constant dense<0.000000e+00> : vector<12x128xf32>
    %40 = tpu.matmul %2, %39, %cst_27 {dimension_numbers = #tpu.dot_dimension_numbers<[1], [0], [0], [1], [0, 0, 1, 1], [], []>} : vector<12x16xbf16>, vector<16x128xbf16>, vector<12x128xf32> -> vector<12x128xf32>
    %41 = vector.broadcast %3 : vector<12x1xf32> to vector<12x128xf32>
    %42 = arith.addf %40, %41 : vector<12x128xf32>
    %cst_28 = arith.constant 0.000000e+00 : f32
    %43 = vector.broadcast %cst_28 : f32 to vector<12x128xf32>
    %44 = arith.maximumf %42, %43 : vector<12x128xf32>
    %45 = arith.truncf %44 : vector<12x128xf32> to vector<12x128xbf16>
    %cst_29 = arith.constant dense<0.000000e+00> : vector<4x128xf32>
    %46 = tpu.matmul %4, %45, %cst_29 {dimension_numbers = #tpu.dot_dimension_numbers<[1], [0], [0], [1], [0, 0, 1, 1], [], []>} : vector<4x12xbf16>, vector<12x128xbf16>, vector<4x128xf32> -> vector<4x128xf32>
    %47 = vector.broadcast %5 : vector<4x1xf32> to vector<4x128xf32>
    %48 = arith.addf %46, %47 : vector<4x128xf32>
    %cst_30 = arith.constant 0.000000e+00 : f32
    %49 = vector.broadcast %cst_30 : f32 to vector<4x128xf32>
    %50 = arith.maximumf %48, %49 : vector<4x128xf32>
    %51 = vector.extract_strided_slice %6 {offsets = [1, 0, 0], sizes = [1, 1, 128], strides = [1, 1, 1]} : vector<8x1x128xf32> to vector<1x1x128xf32>
    %52 = vector.shape_cast %51 : vector<1x1x128xf32> to vector<1x128xf32>
    %53 = vector.broadcast %52 : vector<1x128xf32> to vector<4x128xf32>
    %54 = arith.mulf %50, %53 : vector<4x128xf32>
    %55 = arith.addf %31, %54 : vector<4x128xf32>
    %c2 = arith.constant 2 : index
    %c0_31 = arith.constant 0 : index
    %c0_32 = arith.constant 0 : index
    %56 = vector.load %arg1[%c2, %c0_31, %c0_32] : memref<8x20x128xbf16, #tpu.memory_space<vmem>>, vector<1x20x128xbf16>
    %57 = vector.shape_cast %56 : vector<1x20x128xbf16> to vector<20x128xbf16>
    %cst_33 = arith.constant dense<0.000000e+00> : vector<16x128xf32>
    %58 = tpu.matmul %0, %57, %cst_33 {dimension_numbers = #tpu.dot_dimension_numbers<[1], [0], [0], [1], [0, 0, 1, 1], [], []>} : vector<16x20xbf16>, vector<20x128xbf16>, vector<16x128xf32> -> vector<16x128xf32>
    %59 = vector.broadcast %1 : vector<16x1xf32> to vector<16x128xf32>
    %60 = arith.addf %58, %59 : vector<16x128xf32>
    %cst_34 = arith.constant 0.000000e+00 : f32
    %61 = vector.broadcast %cst_34 : f32 to vector<16x128xf32>
    %62 = arith.maximumf %60, %61 : vector<16x128xf32>
    %63 = arith.truncf %62 : vector<16x128xf32> to vector<16x128xbf16>
    %cst_35 = arith.constant dense<0.000000e+00> : vector<12x128xf32>
    %64 = tpu.matmul %2, %63, %cst_35 {dimension_numbers = #tpu.dot_dimension_numbers<[1], [0], [0], [1], [0, 0, 1, 1], [], []>} : vector<12x16xbf16>, vector<16x128xbf16>, vector<12x128xf32> -> vector<12x128xf32>
    %65 = vector.broadcast %3 : vector<12x1xf32> to vector<12x128xf32>
    %66 = arith.addf %64, %65 : vector<12x128xf32>
    %cst_36 = arith.constant 0.000000e+00 : f32
    %67 = vector.broadcast %cst_36 : f32 to vector<12x128xf32>
    %68 = arith.maximumf %66, %67 : vector<12x128xf32>
    %69 = arith.truncf %68 : vector<12x128xf32> to vector<12x128xbf16>
    %cst_37 = arith.constant dense<0.000000e+00> : vector<4x128xf32>
    %70 = tpu.matmul %4, %69, %cst_37 {dimension_numbers = #tpu.dot_dimension_numbers<[1], [0], [0], [1], [0, 0, 1, 1], [], []>} : vector<4x12xbf16>, vector<12x128xbf16>, vector<4x128xf32> -> vector<4x128xf32>
    %71 = vector.broadcast %5 : vector<4x1xf32> to vector<4x128xf32>
    %72 = arith.addf %70, %71 : vector<4x128xf32>
    %cst_38 = arith.constant 0.000000e+00 : f32
    %73 = vector.broadcast %cst_38 : f32 to vector<4x128xf32>
    %74 = arith.maximumf %72, %73 : vector<4x128xf32>
    %75 = vector.extract_strided_slice %6 {offsets = [2, 0, 0], sizes = [1, 1, 128], strides = [1, 1, 1]} : vector<8x1x128xf32> to vector<1x1x128xf32>
    %76 = vector.shape_cast %75 : vector<1x1x128xf32> to vector<1x128xf32>
    %77 = vector.broadcast %76 : vector<1x128xf32> to vector<4x128xf32>
    %78 = arith.mulf %74, %77 : vector<4x128xf32>
    %79 = arith.addf %55, %78 : vector<4x128xf32>
    %c3 = arith.constant 3 : index
    %c0_39 = arith.constant 0 : index
    %c0_40 = arith.constant 0 : index
    %80 = vector.load %arg1[%c3, %c0_39, %c0_40] : memref<8x20x128xbf16, #tpu.memory_space<vmem>>, vector<1x20x128xbf16>
    %81 = vector.shape_cast %80 : vector<1x20x128xbf16> to vector<20x128xbf16>
    %cst_41 = arith.constant dense<0.000000e+00> : vector<16x128xf32>
    %82 = tpu.matmul %0, %81, %cst_41 {dimension_numbers = #tpu.dot_dimension_numbers<[1], [0], [0], [1], [0, 0, 1, 1], [], []>} : vector<16x20xbf16>, vector<20x128xbf16>, vector<16x128xf32> -> vector<16x128xf32>
    %83 = vector.broadcast %1 : vector<16x1xf32> to vector<16x128xf32>
    %84 = arith.addf %82, %83 : vector<16x128xf32>
    %cst_42 = arith.constant 0.000000e+00 : f32
    %85 = vector.broadcast %cst_42 : f32 to vector<16x128xf32>
    %86 = arith.maximumf %84, %85 : vector<16x128xf32>
    %87 = arith.truncf %86 : vector<16x128xf32> to vector<16x128xbf16>
    %cst_43 = arith.constant dense<0.000000e+00> : vector<12x128xf32>
    %88 = tpu.matmul %2, %87, %cst_43 {dimension_numbers = #tpu.dot_dimension_numbers<[1], [0], [0], [1], [0, 0, 1, 1], [], []>} : vector<12x16xbf16>, vector<16x128xbf16>, vector<12x128xf32> -> vector<12x128xf32>
    %89 = vector.broadcast %3 : vector<12x1xf32> to vector<12x128xf32>
    %90 = arith.addf %88, %89 : vector<12x128xf32>
    %cst_44 = arith.constant 0.000000e+00 : f32
    %91 = vector.broadcast %cst_44 : f32 to vector<12x128xf32>
    %92 = arith.maximumf %90, %91 : vector<12x128xf32>
    %93 = arith.truncf %92 : vector<12x128xf32> to vector<12x128xbf16>
    %cst_45 = arith.constant dense<0.000000e+00> : vector<4x128xf32>
    %94 = tpu.matmul %4, %93, %cst_45 {dimension_numbers = #tpu.dot_dimension_numbers<[1], [0], [0], [1], [0, 0, 1, 1], [], []>} : vector<4x12xbf16>, vector<12x128xbf16>, vector<4x128xf32> -> vector<4x128xf32>
    %95 = vector.broadcast %5 : vector<4x1xf32> to vector<4x128xf32>
    %96 = arith.addf %94, %95 : vector<4x128xf32>
    %cst_46 = arith.constant 0.000000e+00 : f32
    %97 = vector.broadcast %cst_46 : f32 to vector<4x128xf32>
    %98 = arith.maximumf %96, %97 : vector<4x128xf32>
    %99 = vector.extract_strided_slice %6 {offsets = [3, 0, 0], sizes = [1, 1, 128], strides = [1, 1, 1]} : vector<8x1x128xf32> to vector<1x1x128xf32>
    %100 = vector.shape_cast %99 : vector<1x1x128xf32> to vector<1x128xf32>
    %101 = vector.broadcast %100 : vector<1x128xf32> to vector<4x128xf32>
    %102 = arith.mulf %98, %101 : vector<4x128xf32>
    %103 = arith.addf %79, %102 : vector<4x128xf32>
    %c4 = arith.constant 4 : index
    %c0_47 = arith.constant 0 : index
    %c0_48 = arith.constant 0 : index
    %104 = vector.load %arg1[%c4, %c0_47, %c0_48] : memref<8x20x128xbf16, #tpu.memory_space<vmem>>, vector<1x20x128xbf16>
    %105 = vector.shape_cast %104 : vector<1x20x128xbf16> to vector<20x128xbf16>
    %cst_49 = arith.constant dense<0.000000e+00> : vector<16x128xf32>
    %106 = tpu.matmul %0, %105, %cst_49 {dimension_numbers = #tpu.dot_dimension_numbers<[1], [0], [0], [1], [0, 0, 1, 1], [], []>} : vector<16x20xbf16>, vector<20x128xbf16>, vector<16x128xf32> -> vector<16x128xf32>
    %107 = vector.broadcast %1 : vector<16x1xf32> to vector<16x128xf32>
    %108 = arith.addf %106, %107 : vector<16x128xf32>
    %cst_50 = arith.constant 0.000000e+00 : f32
    %109 = vector.broadcast %cst_50 : f32 to vector<16x128xf32>
    %110 = arith.maximumf %108, %109 : vector<16x128xf32>
    %111 = arith.truncf %110 : vector<16x128xf32> to vector<16x128xbf16>
    %cst_51 = arith.constant dense<0.000000e+00> : vector<12x128xf32>
    %112 = tpu.matmul %2, %111, %cst_51 {dimension_numbers = #tpu.dot_dimension_numbers<[1], [0], [0], [1], [0, 0, 1, 1], [], []>} : vector<12x16xbf16>, vector<16x128xbf16>, vector<12x128xf32> -> vector<12x128xf32>
    %113 = vector.broadcast %3 : vector<12x1xf32> to vector<12x128xf32>
    %114 = arith.addf %112, %113 : vector<12x128xf32>
    %cst_52 = arith.constant 0.000000e+00 : f32
    %115 = vector.broadcast %cst_52 : f32 to vector<12x128xf32>
    %116 = arith.maximumf %114, %115 : vector<12x128xf32>
    %117 = arith.truncf %116 : vector<12x128xf32> to vector<12x128xbf16>
    %cst_53 = arith.constant dense<0.000000e+00> : vector<4x128xf32>
    %118 = tpu.matmul %4, %117, %cst_53 {dimension_numbers = #tpu.dot_dimension_numbers<[1], [0], [0], [1], [0, 0, 1, 1], [], []>} : vector<4x12xbf16>, vector<12x128xbf16>, vector<4x128xf32> -> vector<4x128xf32>
    %119 = vector.broadcast %5 : vector<4x1xf32> to vector<4x128xf32>
    %120 = arith.addf %118, %119 : vector<4x128xf32>
    %cst_54 = arith.constant 0.000000e+00 : f32
    %121 = vector.broadcast %cst_54 : f32 to vector<4x128xf32>
    %122 = arith.maximumf %120, %121 : vector<4x128xf32>
    %123 = vector.extract_strided_slice %6 {offsets = [4, 0, 0], sizes = [1, 1, 128], strides = [1, 1, 1]} : vector<8x1x128xf32> to vector<1x1x128xf32>
    %124 = vector.shape_cast %123 : vector<1x1x128xf32> to vector<1x128xf32>
    %125 = vector.broadcast %124 : vector<1x128xf32> to vector<4x128xf32>
    %126 = arith.mulf %122, %125 : vector<4x128xf32>
    %127 = arith.addf %103, %126 : vector<4x128xf32>
    %c5 = arith.constant 5 : index
    %c0_55 = arith.constant 0 : index
    %c0_56 = arith.constant 0 : index
    %128 = vector.load %arg1[%c5, %c0_55, %c0_56] : memref<8x20x128xbf16, #tpu.memory_space<vmem>>, vector<1x20x128xbf16>
    %129 = vector.shape_cast %128 : vector<1x20x128xbf16> to vector<20x128xbf16>
    %cst_57 = arith.constant dense<0.000000e+00> : vector<16x128xf32>
    %130 = tpu.matmul %0, %129, %cst_57 {dimension_numbers = #tpu.dot_dimension_numbers<[1], [0], [0], [1], [0, 0, 1, 1], [], []>} : vector<16x20xbf16>, vector<20x128xbf16>, vector<16x128xf32> -> vector<16x128xf32>
    %131 = vector.broadcast %1 : vector<16x1xf32> to vector<16x128xf32>
    %132 = arith.addf %130, %131 : vector<16x128xf32>
    %cst_58 = arith.constant 0.000000e+00 : f32
    %133 = vector.broadcast %cst_58 : f32 to vector<16x128xf32>
    %134 = arith.maximumf %132, %133 : vector<16x128xf32>
    %135 = arith.truncf %134 : vector<16x128xf32> to vector<16x128xbf16>
    %cst_59 = arith.constant dense<0.000000e+00> : vector<12x128xf32>
    %136 = tpu.matmul %2, %135, %cst_59 {dimension_numbers = #tpu.dot_dimension_numbers<[1], [0], [0], [1], [0, 0, 1, 1], [], []>} : vector<12x16xbf16>, vector<16x128xbf16>, vector<12x128xf32> -> vector<12x128xf32>
    %137 = vector.broadcast %3 : vector<12x1xf32> to vector<12x128xf32>
    %138 = arith.addf %136, %137 : vector<12x128xf32>
    %cst_60 = arith.constant 0.000000e+00 : f32
    %139 = vector.broadcast %cst_60 : f32 to vector<12x128xf32>
    %140 = arith.maximumf %138, %139 : vector<12x128xf32>
    %141 = arith.truncf %140 : vector<12x128xf32> to vector<12x128xbf16>
    %cst_61 = arith.constant dense<0.000000e+00> : vector<4x128xf32>
    %142 = tpu.matmul %4, %141, %cst_61 {dimension_numbers = #tpu.dot_dimension_numbers<[1], [0], [0], [1], [0, 0, 1, 1], [], []>} : vector<4x12xbf16>, vector<12x128xbf16>, vector<4x128xf32> -> vector<4x128xf32>
    %143 = vector.broadcast %5 : vector<4x1xf32> to vector<4x128xf32>
    %144 = arith.addf %142, %143 : vector<4x128xf32>
    %cst_62 = arith.constant 0.000000e+00 : f32
    %145 = vector.broadcast %cst_62 : f32 to vector<4x128xf32>
    %146 = arith.maximumf %144, %145 : vector<4x128xf32>
    %147 = vector.extract_strided_slice %6 {offsets = [5, 0, 0], sizes = [1, 1, 128], strides = [1, 1, 1]} : vector<8x1x128xf32> to vector<1x1x128xf32>
    %148 = vector.shape_cast %147 : vector<1x1x128xf32> to vector<1x128xf32>
    %149 = vector.broadcast %148 : vector<1x128xf32> to vector<4x128xf32>
    %150 = arith.mulf %146, %149 : vector<4x128xf32>
    %151 = arith.addf %127, %150 : vector<4x128xf32>
    %c6 = arith.constant 6 : index
    %c0_63 = arith.constant 0 : index
    %c0_64 = arith.constant 0 : index
    %152 = vector.load %arg1[%c6, %c0_63, %c0_64] : memref<8x20x128xbf16, #tpu.memory_space<vmem>>, vector<1x20x128xbf16>
    %153 = vector.shape_cast %152 : vector<1x20x128xbf16> to vector<20x128xbf16>
    %cst_65 = arith.constant dense<0.000000e+00> : vector<16x128xf32>
    %154 = tpu.matmul %0, %153, %cst_65 {dimension_numbers = #tpu.dot_dimension_numbers<[1], [0], [0], [1], [0, 0, 1, 1], [], []>} : vector<16x20xbf16>, vector<20x128xbf16>, vector<16x128xf32> -> vector<16x128xf32>
    %155 = vector.broadcast %1 : vector<16x1xf32> to vector<16x128xf32>
    %156 = arith.addf %154, %155 : vector<16x128xf32>
    %cst_66 = arith.constant 0.000000e+00 : f32
    %157 = vector.broadcast %cst_66 : f32 to vector<16x128xf32>
    %158 = arith.maximumf %156, %157 : vector<16x128xf32>
    %159 = arith.truncf %158 : vector<16x128xf32> to vector<16x128xbf16>
    %cst_67 = arith.constant dense<0.000000e+00> : vector<12x128xf32>
    %160 = tpu.matmul %2, %159, %cst_67 {dimension_numbers = #tpu.dot_dimension_numbers<[1], [0], [0], [1], [0, 0, 1, 1], [], []>} : vector<12x16xbf16>, vector<16x128xbf16>, vector<12x128xf32> -> vector<12x128xf32>
    %161 = vector.broadcast %3 : vector<12x1xf32> to vector<12x128xf32>
    %162 = arith.addf %160, %161 : vector<12x128xf32>
    %cst_68 = arith.constant 0.000000e+00 : f32
    %163 = vector.broadcast %cst_68 : f32 to vector<12x128xf32>
    %164 = arith.maximumf %162, %163 : vector<12x128xf32>
    %165 = arith.truncf %164 : vector<12x128xf32> to vector<12x128xbf16>
    %cst_69 = arith.constant dense<0.000000e+00> : vector<4x128xf32>
    %166 = tpu.matmul %4, %165, %cst_69 {dimension_numbers = #tpu.dot_dimension_numbers<[1], [0], [0], [1], [0, 0, 1, 1], [], []>} : vector<4x12xbf16>, vector<12x128xbf16>, vector<4x128xf32> -> vector<4x128xf32>
    %167 = vector.broadcast %5 : vector<4x1xf32> to vector<4x128xf32>
    %168 = arith.addf %166, %167 : vector<4x128xf32>
    %cst_70 = arith.constant 0.000000e+00 : f32
    %169 = vector.broadcast %cst_70 : f32 to vector<4x128xf32>
    %170 = arith.maximumf %168, %169 : vector<4x128xf32>
    %171 = vector.extract_strided_slice %6 {offsets = [6, 0, 0], sizes = [1, 1, 128], strides = [1, 1, 1]} : vector<8x1x128xf32> to vector<1x1x128xf32>
    %172 = vector.shape_cast %171 : vector<1x1x128xf32> to vector<1x128xf32>
    %173 = vector.broadcast %172 : vector<1x128xf32> to vector<4x128xf32>
    %174 = arith.mulf %170, %173 : vector<4x128xf32>
    %175 = arith.addf %151, %174 : vector<4x128xf32>
    %c7 = arith.constant 7 : index
    %c0_71 = arith.constant 0 : index
    %c0_72 = arith.constant 0 : index
    %176 = vector.load %arg1[%c7, %c0_71, %c0_72] : memref<8x20x128xbf16, #tpu.memory_space<vmem>>, vector<1x20x128xbf16>
    %177 = vector.shape_cast %176 : vector<1x20x128xbf16> to vector<20x128xbf16>
    %cst_73 = arith.constant dense<0.000000e+00> : vector<16x128xf32>
    %178 = tpu.matmul %0, %177, %cst_73 {dimension_numbers = #tpu.dot_dimension_numbers<[1], [0], [0], [1], [0, 0, 1, 1], [], []>} : vector<16x20xbf16>, vector<20x128xbf16>, vector<16x128xf32> -> vector<16x128xf32>
    %179 = vector.broadcast %1 : vector<16x1xf32> to vector<16x128xf32>
    %180 = arith.addf %178, %179 : vector<16x128xf32>
    %cst_74 = arith.constant 0.000000e+00 : f32
    %181 = vector.broadcast %cst_74 : f32 to vector<16x128xf32>
    %182 = arith.maximumf %180, %181 : vector<16x128xf32>
    %183 = arith.truncf %182 : vector<16x128xf32> to vector<16x128xbf16>
    %cst_75 = arith.constant dense<0.000000e+00> : vector<12x128xf32>
    %184 = tpu.matmul %2, %183, %cst_75 {dimension_numbers = #tpu.dot_dimension_numbers<[1], [0], [0], [1], [0, 0, 1, 1], [], []>} : vector<12x16xbf16>, vector<16x128xbf16>, vector<12x128xf32> -> vector<12x128xf32>
    %185 = vector.broadcast %3 : vector<12x1xf32> to vector<12x128xf32>
    %186 = arith.addf %184, %185 : vector<12x128xf32>
    %cst_76 = arith.constant 0.000000e+00 : f32
    %187 = vector.broadcast %cst_76 : f32 to vector<12x128xf32>
    %188 = arith.maximumf %186, %187 : vector<12x128xf32>
    %189 = arith.truncf %188 : vector<12x128xf32> to vector<12x128xbf16>
    %cst_77 = arith.constant dense<0.000000e+00> : vector<4x128xf32>
    %190 = tpu.matmul %4, %189, %cst_77 {dimension_numbers = #tpu.dot_dimension_numbers<[1], [0], [0], [1], [0, 0, 1, 1], [], []>} : vector<4x12xbf16>, vector<12x128xbf16>, vector<4x128xf32> -> vector<4x128xf32>
    %191 = vector.broadcast %5 : vector<4x1xf32> to vector<4x128xf32>
    %192 = arith.addf %190, %191 : vector<4x128xf32>
    %cst_78 = arith.constant 0.000000e+00 : f32
    %193 = vector.broadcast %cst_78 : f32 to vector<4x128xf32>
    %194 = arith.maximumf %192, %193 : vector<4x128xf32>
    %195 = vector.extract_strided_slice %6 {offsets = [7, 0, 0], sizes = [1, 1, 128], strides = [1, 1, 1]} : vector<8x1x128xf32> to vector<1x1x128xf32>
    %196 = vector.shape_cast %195 : vector<1x1x128xf32> to vector<1x128xf32>
    %197 = vector.broadcast %196 : vector<1x128xf32> to vector<4x128xf32>
    %198 = arith.mulf %194, %197 : vector<4x128xf32>
    %199 = arith.addf %175, %198 : vector<4x128xf32>
    %cst_79 = arith.constant dense<0.000000e+00> : vector<1x128xf32>
    %200 = vector.multi_reduction <add>, %6, %cst_79 [0] : vector<8x1x128xf32> to vector<1x128xf32>
    %cst_80 = arith.constant 1.000000e-03 : f32
    %201 = vector.broadcast %cst_80 : f32 to vector<1x128xf32>
    %202 = arith.addf %200, %201 : vector<1x128xf32>
    %203 = tpu.reciprocal %202 : vector<1x128xf32> -> vector<1x128xf32>
    %204 = vector.broadcast %203 : vector<1x128xf32> to vector<4x128xf32>
    %205 = arith.mulf %199, %204 : vector<4x128xf32>
    %c0_81 = arith.constant 0 : index
    %c0_82 = arith.constant 0 : index
    %206 = vector.load %arg9[%c0_81, %c0_82] : memref<4x128xf32, #tpu.memory_space<vmem>>, vector<4x128xf32>
    tpu.vector_store %arg9[%c0_81, %c0_82], %205 {strides = array<i32>} : memref<4x128xf32, #tpu.memory_space<vmem>>, vector<4x128xf32>,
    return
  }
  func.func @transform_0(%arg0: i32) -> (i32, i32, i32) {
    %c0_i32 = arith.constant 0 : i32
    %c0_i32_0 = arith.constant 0 : i32
    %c0_i32_1 = arith.constant 0 : i32
    return %c0_i32, %c0_i32_0, %arg0 : i32, i32, i32
  }
  func.func @transform_1(%arg0: i32) -> (i32, i32, i32) {
    %c0_i32 = arith.constant 0 : i32
    %c0_i32_0 = arith.constant 0 : i32
    %c0_i32_1 = arith.constant 0 : i32
    return %c0_i32, %c0_i32_0, %arg0 : i32, i32, i32
  }
  func.func @transform_2(%arg0: i32) -> (i32, i32) {
    %c0_i32 = arith.constant 0 : i32
    %c0_i32_0 = arith.constant 0 : i32
    %c0_i32_1 = arith.constant 0 : i32
    return %c0_i32, %c0_i32_0 : i32, i32
  }
  func.func @transform_3(%arg0: i32) -> (i32, i32) {
    %c0_i32 = arith.constant 0 : i32
    %c0_i32_0 = arith.constant 0 : i32
    %c0_i32_1 = arith.constant 0 : i32
    return %c0_i32, %c0_i32_0 : i32, i32
  }
  func.func @transform_4(%arg0: i32) -> (i32, i32) {
    %c0_i32 = arith.constant 0 : i32
    %c0_i32_0 = arith.constant 0 : i32
    %c0_i32_1 = arith.constant 0 : i32
    return %c0_i32, %c0_i32_0 : i32, i32
  }
  func.func @transform_5(%arg0: i32) -> (i32, i32) {
    %c0_i32 = arith.constant 0 : i32
    %c0_i32_0 = arith.constant 0 : i32
    %c0_i32_1 = arith.constant 0 : i32
    return %c0_i32, %c0_i32_0 : i32, i32
  }
  func.func @transform_6(%arg0: i32) -> (i32, i32) {
    %c0_i32 = arith.constant 0 : i32
    %c0_i32_0 = arith.constant 0 : i32
    %c0_i32_1 = arith.constant 0 : i32
    return %c0_i32, %c0_i32_0 : i32, i32
  }
  func.func @transform_7(%arg0: i32) -> (i32, i32) {
    %c0_i32 = arith.constant 0 : i32
    %c0_i32_0 = arith.constant 0 : i32
    %c0_i32_1 = arith.constant 0 : i32
    return %c0_i32, %c0_i32_0 : i32, i32
  }
  func.func @transform_8(%arg0: i32) -> (i32, i32) {
    %c0_i32 = arith.constant 0 : i32
    %c0_i32_0 = arith.constant 0 : i32
    return %c0_i32, %arg0 : i32, i32
  }
}

</mosaic_0001>

<bundles_post_ra>
// kernel: player_rating_forward.1
= control target key start
LH: loop header
LB: loop body
LE: loop exit
PB: predicated region body
PF: predicated region fallthrough
CT: control target
= control target key end

     0   :  { %vm79_vm0 = vcmask 1041408   ;;  %v1676_v0 = vmov 0.0   ;;  %vm1677_vm1 = vmmov 0   ;;  %v1678_v3 = vmov 0   ;;  %s2058_s0 = inlined_call_operand.vmem [shape: bf16[8,20,128], index: 0, kind: input, shape index: {}]   ;;  %s2059_s2 = inlined_call_operand.vmem [shape: bf16[16,20], index: 2, kind: input, shape index: {}]   ;;  %s2060_s3 = inlined_call_operand.vmem [shape: f32[16,1], index: 3, kind: input, shape index: {}]   ;;  %s2061_s7 = inlined_call_operand.vmem [shape: f32[4,1], index: 7, kind: input, shape index: {}]   ;;  %s2062_s4 = inlined_call_operand.vmem [shape: bf16[12,16], index: 4, kind: input, shape index: {}]   ;;  %s2063_s5 = inlined_call_operand.vmem [shape: f32[12,1], index: 5, kind: input, shape index: {}]   ;;  %s2064_s6 = inlined_call_operand.vmem [shape: bf16[4,12], index: 6, kind: input, shape index: {}]   ;;  %s2065_s1 = inlined_call_operand.vmem [shape: f32[8,1,128], index: 1, kind: input, shape index: {}]   ;;  %s2066_s8 = inlined_call_operand.vmem [shape: f32[4,128], index: 8, kind: output, shape index: {}]  }
   0x1   :  { %1491 = vmatprep.subr.bf16.mxu0 %v1676_v0  ;;  %v1656_v1 = vld [vmem:[%s2058_s0] sm:$0xff]   ;;  %1495 = vmatprep.mubr.msk.bf16.mxu0 %vm1677_vm1, %v1676_v0  ;;  %v1657_v2 = vld [vmem:[%s2058_s0 + $0x8] ss:$0 sps:$4 sm:$0x33]   ;;  %v1659_v7 = vld [vmem:[%s2058_s0 + $0xc] sm:$0xff]   ;;  %vm75_vm2 = vcmask 162816  }
   0x2   :  { %1654 = vset.pattern.permute.xlu0 %v1678_v3  ;;  %1499 = vmatprep.subr.bf16.mxu1 %v1676_v0  ;;  %v81_v4 = vsel %vm79_vm0, %v1657_v2, 0  ;;  %v1741_v5 = vld [vmem:[%s2059_s2] sm:$0xff]   ;;  %v1660_v8 = vld [vmem:[%s2058_s0 + $0x14] ss:$0 sps:$4 sm:$0x33]   ;;  %v33_v9 = vld [vmem:[%s2060_s3 + $0x8] sm:$0xff] }
   0x3   :  { %1492 = vmatpush3.bf16.msra.mxu0 %v1656_v1  ;;  %1501 = vmatprep.mubr.msk.bf16.mxu1 %vm1677_vm1, %v1676_v0  ;;  %v32_v6 = vld [vmem:[%s2060_s3] sm:$0xff]  ;;  %v266_v11 = vsel %vm79_vm0, %v1660_v8, 0  ;;  %v37_v13 = vld [vmem:[%s2063_s5 + $0x8] sm:$0xf]  ;;  %vm142_vm3 = vcmask 130048   ;;  %vm199_vm4 = vcmask 1045504  }
   0x4   :  { %1493 = vmatprep.subr.bf16.mxu0 %v1676_v0  ;;  %1655 = vset.pattern.permute.xlu1 %v1678_v3  ;;  %v39_v10 = vld [vmem:[%s2061_s7] sm:$0xf]  ;;  %vm195_vm5 = vcmask 97280   ;;  %v1662_v48 = vld [vmem:[%s2058_s0 + $0x18] sm:$0xff]   ;;  %vm1344_vm6 = vcmask 1040384  }
   0x5   :  { %53 = vperm.xlu0 %1654, %v32_v6   ;;  %v36_v12 = vld [vmem:[%s2063_s5] sm:$0xff] }
   0x6   :  { %129 = vperm.xlu1 %1655, %v36_v12   ;;  %v1785_v26 = vld [vmem:[%s2062_s4] sm:$0x3f]  }
   0x7   :  { %1494 = vmatpush3.bf16.msra.mxu0 %v81_v4  ;;  %v1804_v47 = vld [vmem:[%s2064_s6] sm:$0x3]  ;;  %v1664_v12 = vld [vmem:[%s2058_s0 + $0x24] sm:$0xff]  }
   0x8   :  { %1511 = vmatprep.subr.bf16.mxu0 %v1676_v0  ;;  %v1663_v49 = vld [vmem:[%s2058_s0 + $0x20] ss:$0 sps:$4 sm:$0x33]  }
   0x9   :  { %58 = vperm.xlu0 %1654, %v33_v9   ;;  %v422_v50 = vsel %vm79_vm0, %v1663_v49, 0 }
   0xa   :  { %1496 = vmatmul.mubr.msk.bf16.vlgmr.msra.gmra.mrb[0].mxu0 %vm75_vm2, %v1741_v5  ;;  %134 = vperm.xlu1 %1655, %v37_v13   ;;  %v1665_v13 = vld [vmem:[%s2058_s0 + $0x2c] ss:$0 sps:$4 sm:$0x33]  }
   0xb   :  { %1512 = vmatpush3.bf16.msra.mxu0 %v1659_v7  ;;  %1515 = vmatprep.mubr.msk.bf16.mxu0 %vm1677_vm1, %v1676_v0 }
   0xc   :  { %1513 = vmatprep.subr.bf16.mxu0 %v1676_v0 }
   0xd   :  { %192 = vperm.xlu0 %1654, %v39_v10  }
   0xf   :  { %1514 = vmatpush3.bf16.msra.mxu0 %v266_v11 }
  0x10   :  { %1525 = vmatprep.subr.bf16.mxu0 %v1676_v0 }
  0x12   :  { %1516 = vmatmul.mubr.msk.bf16.vlgmr.msra.gmra.mrb[4].mxu0 %vm75_vm2, %v1741_v5 }
  0x13   :  { %1527 = vmatprep.mubr.msk.bf16.mxu0 %vm1677_vm1, %v1676_v0 }
  0x84   :  { %v1776_v14 = vpop.permute.xlu0 %53 }
  0x85   :  { %v1794_v35 = vpop.permute.xlu1 %129 }
  0x88   :  { %v1779_v18 = vpop.permute.xlu0 %58 }
  0x89   :  { %v1797_v39 = vpop.permute.xlu1 %134 }
  0xdd   :  { %v117_v15 = vpop.f32.mrb[0].mxu0 }
  0xde   :  { %v118_v16 = vadd.f32 %v117_v15, %v1776_v14  ;;  %v1497_v17 = vpop.f32.mrb[1].mxu0  ;;  %v578_v15 = vsel %vm79_vm0, %v1665_v13, 0 }
  0xdf   :  { %v120_v19 = vpop.f32.mrb[2].mxu0 }
  0xe0   :  { %v121_v20 = vadd.f32 %v120_v19, %v1779_v18  ;;  %v1498_v21 = vpop.f32.mrb[3].mxu0  ;;  %v124_v22 = vmax.f32 %v118_v16, 0.0  ;;  %v245_v16 = vlaneseq  ;;  %v1857_v19 = vpop.permute.xlu0 %192 }
  0xe2   :  { %v125_v23 = vmax.f32 %v121_v20, 0.0  ;;  %v246_v17 = vshrl.u32 %v245_v16, 7 }
  0xe4   :  { %v126_v24 = vpack.c.bf16 %v125_v23, %v124_v22  ;;  %v1860_v21 = vsub.s32 0, %v246_v17  ;;  %v1865_v22 = vld [vmem:[%s2065_s1] sm:$0x1]  ;;  %v1870_v23 = vld [vmem:[%s2065_s1 + $0x1] sm:$0x1] }
  0xe5   :  { %v302_v25 = vpop.f32.mrb[4].mxu0 }
  0xe6   :  { %v303_v27 = vadd.f32 %v302_v25, %v1776_v14  ;;  %1500 = vmatpush3.bf16.msra.mxu1 %v126_v24  ;;  %v1517_v28 = vpop.f32.mrb[5].mxu0 }
  0xe7   :  { %v305_v29 = vpop.f32.mrb[6].mxu0  ;;  %1505 = vmatprep.subr.bf16.mxu1 %v1676_v0 }
  0xe8   :  { %v306_v30 = vadd.f32 %v305_v29, %v1779_v18  ;;  %v1518_v31 = vpop.f32.mrb[7].mxu0  ;;  %v309_v32 = vmax.f32 %v303_v27, 0.0  ;;  %v248_v27 = vrot.slane %v1865_v22, %v1860_v21  ;;  %v404_v29 = vrot.slane %v1870_v23, %v1860_v21 }
  0xe9   :  { %1502 = vmatmul.mubr.msk.bf16.vlgmr.msra.gmra.mrb[0].mxu1 %vm142_vm3, %v1785_v26 }
  0xea   :  { %v310_v33 = vmax.f32 %v306_v30, 0.0  ;;  %1507 = vmatprep.mubr.msk.bf16.mxu1 %vm1677_vm1, %v1676_v0 }
  0xec   :  { %v311_v34 = vpack.c.bf16 %v310_v33, %v309_v32 }
 0x1bc   :  { %v180_v36 = vpop.f32.mrb[0].mxu1 }
 0x1bd   :  { %v181_v37 = vadd.f32 %v180_v36, %v1794_v35  ;;  %v1503_v38 = vpop.f32.mrb[1].mxu1 }
 0x1be   :  { %v183_v40 = vpop.f32.mrb[2].mxu1 }
 0x1bf   :  { %v184_v41 = vadd.f32 %v183_v40, %v1797_v39  ;;  %v1504_v42 = vpop.f32.mrb[3].mxu1  ;;  %v187_v43 = vmax.f32 %v181_v37, 0.0 }
 0x1c1   :  { %v188_v44 = vmax.f32 %v184_v41, 0.0 }
 0x1c3   :  { %v189_v45 = vpack.c.bf16 %v188_v44, %v187_v43 }
 0x1c5   :  { %v201_v46 = vsel %vm199_vm4, %v189_v45, 0 }
 0x1c6   :  { %1506 = vmatpush3.bf16.msra.mxu1 %v201_v46 }
 0x1c7   :  { %1519 = vmatprep.subr.bf16.mxu1 %v1676_v0 }
 0x1c9   :  { %1508 = vmatmul.mubr.msk.bf16.vlgmr.msra.gmra.mrb[4].mxu1 %vm195_vm5, %v1804_v47 }
 0x1ca   :  { %1520 = vmatpush3.bf16.msra.mxu1 %v311_v34  ;;  %1521 = vmatprep.mubr.msk.bf16.mxu1 %vm1677_vm1, %v1676_v0 }
 0x1cb   :  { %1531 = vmatprep.subr.bf16.mxu1 %v1676_v0 }
 0x1d1   :  { %1522 = vmatmul.mubr.msk.bf16.vlgmr.msra.gmra.mrb[8].mxu1 %vm142_vm3, %v1785_v26 }
 0x1d2   :  { %1532 = vmatpush3.bf16.msra.mxu1 %v1662_v48  ;;  %1535 = vmatprep.mubr.msk.bf16.mxu1 %vm1677_vm1, %v1676_v0 }
 0x1d3   :  { %1533 = vmatprep.subr.bf16.mxu1 %v1676_v0 }
 0x1d6   :  { %1534 = vmatpush3.bf16.msra.mxu1 %v422_v50 }
 0x1d7   :  { %1545 = vmatprep.subr.bf16.mxu1 %v1676_v0 }
 0x1d9   :  { %1536 = vmatmul.mubr.msk.bf16.vlgmr.msra.gmra.mrb[12].mxu1 %vm75_vm2, %v1741_v5 }
 0x1da   :  { %1547 = vmatprep.mubr.msk.bf16.mxu1 %vm1677_vm1, %v1676_v0 }
 0x29c   :  { %v237_v51 = vpop.f32.mrb[4].mxu1 }
 0x29d   :  { %v1509_v52 = vpop.f32.mrb[5].mxu1  ;;  %v238_v20 = vadd.f32 %v237_v51, %v1857_v19 }
 0x29e   :  { %v240_v53 = vpop.f32.mrb[6].mxu1 }
 0x29f   :  { %v1510_v54 = vpop.f32.mrb[7].mxu1  ;;  %v243_v25 = vmax.f32 %v238_v20, 0.0 }
 0x2a1   :  { %v250_v34 = vmul.f32 %v248_v27, %v243_v25 }
 0x2a4   :  { %v346_v55 = vpop.f32.mrb[8].mxu1 }
 0x2a5   :  { %v347_v56 = vadd.f32 %v346_v55, %v1794_v35  ;;  %v1523_v57 = vpop.f32.mrb[9].mxu1 }
 0x2a6   :  { %v349_v58 = vpop.f32.mrb[10].mxu1 }
 0x2a7   :  { %v350_v59 = vadd.f32 %v349_v58, %v1797_v39  ;;  %v1524_v60 = vpop.f32.mrb[11].mxu1  ;;  %v353_v61 = vmax.f32 %v347_v56, 0.0 }
 0x2a8   :  { %v1667_v60 = vld [vmem:[%s2058_s0 + $0x38] ss:$0 sps:$4 sm:$0x33]  }
 0x2a9   :  { %v354_v62 = vmax.f32 %v350_v59, 0.0  ;;  %v1666_v59 = vld [vmem:[%s2058_s0 + $0x30] sm:$0xff]  }
 0x2ab   :  { %v355_v63 = vpack.c.bf16 %v354_v62, %v353_v61  ;;  %v734_v61 = vsel %vm79_vm0, %v1667_v60, 0  ;;  %v1908_v62 = vld [vmem:[%s2065_s1 + $0x2] sm:$0x1] }
 0x2ac   :  { %v458_v1 = vpop.f32.mrb[12].mxu1 }
 0x2ad   :  { %v459_v2 = vadd.f32 %v458_v1, %v1776_v14  ;;  %v1537_v3 = vpop.f32.mrb[13].mxu1  ;;  %v357_v4 = vsel %vm199_vm4, %v355_v63, 0 }
 0x2ae   :  { %1526 = vmatpush3.bf16.msra.mxu0 %v357_v4  ;;  %v461_v6 = vpop.f32.mrb[14].mxu1 }
 0x2af   :  { %v462_v7 = vadd.f32 %v461_v6, %v1779_v18  ;;  %v1538_v8 = vpop.f32.mrb[15].mxu1  ;;  %1539 = vmatprep.subr.bf16.mxu0 %v1676_v0  ;;  %v465_v9 = vmax.f32 %v459_v2, 0.0  ;;  %v560_v2 = vrot.slane %v1908_v62, %v1860_v21 }
 0x2b1   :  { %v466_v10 = vmax.f32 %v462_v7, 0.0  ;;  %1528 = vmatmul.mubr.msk.bf16.vlgmr.msra.gmra.mrb[8].mxu0 %vm195_vm5, %v1804_v47 }
 0x2b2   :  { %1541 = vmatprep.mubr.msk.bf16.mxu0 %vm1677_vm1, %v1676_v0 }
 0x2b3   :  { %v467_v11 = vpack.c.bf16 %v466_v10, %v465_v9 }
 0x2b5   :  { %1540 = vmatpush3.bf16.msra.mxu0 %v467_v11 }
 0x2b6   :  { %1551 = vmatprep.subr.bf16.mxu0 %v1676_v0 }
 0x2b9   :  { %1542 = vmatmul.mubr.msk.bf16.vlgmr.msra.gmra.mrb[12].mxu0 %vm142_vm3, %v1785_v26 }
 0x2ba   :  { %1552 = vmatpush3.bf16.msra.mxu0 %v1664_v12  ;;  %1555 = vmatprep.mubr.msk.bf16.mxu0 %vm1677_vm1, %v1676_v0 }
 0x2bb   :  { %1553 = vmatprep.subr.bf16.mxu0 %v1676_v0 }
 0x2be   :  { %1554 = vmatpush3.bf16.msra.mxu0 %v578_v15 }
 0x2bf   :  { %1565 = vmatprep.subr.bf16.mxu0 %v1676_v0 }
 0x2c1   :  { %1556 = vmatmul.mubr.msk.bf16.vlgmr.msra.gmra.mrb[16].mxu0 %vm75_vm2, %v1741_v5 }
 0x2c2   :  { %1567 = vmatprep.mubr.msk.bf16.mxu0 %vm1677_vm1, %v1676_v0 }
 0x384   :  { %v393_v24 = vpop.f32.mrb[8].mxu0 }
 0x385   :  { %v394_v28 = vadd.f32 %v393_v24, %v1857_v19  ;;  %v1529_v30 = vpop.f32.mrb[9].mxu0 }
 0x386   :  { %v396_v31 = vpop.f32.mrb[10].mxu0 }
 0x387   :  { %v399_v32 = vmax.f32 %v394_v28, 0.0  ;;  %v1530_v33 = vpop.f32.mrb[11].mxu0 }
 0x389   :  { %v406_v36 = vmul.f32 %v404_v29, %v399_v32 }
 0x38b   :  { %v407_v37 = vadd.f32 %v406_v36, %v250_v34 }
 0x38c   :  { %v502_v38 = vpop.f32.mrb[12].mxu0 }
 0x38d   :  { %v503_v40 = vadd.f32 %v502_v38, %v1794_v35  ;;  %v1543_v41 = vpop.f32.mrb[13].mxu0  ;;  %v1669_v38 = vld [vmem:[%s2058_s0 + $0x44] ss:$0 sps:$4 sm:$0x33]  }
 0x38e   :  { %v505_v42 = vpop.f32.mrb[14].mxu0  ;;  %v1944_v41 = vld [vmem:[%s2065_s1 + $0x3] sm:$0x1] }
 0x38f   :  { %v506_v43 = vadd.f32 %v505_v42, %v1797_v39  ;;  %v1544_v44 = vpop.f32.mrb[15].mxu0  ;;  %v509_v45 = vmax.f32 %v503_v40, 0.0  ;;  %v890_v40 = vsel %vm79_vm0, %v1669_v38, 0 }
 0x390   :  { %v716_v44 = vrot.slane %v1944_v41, %v1860_v21 }
 0x391   :  { %v510_v46 = vmax.f32 %v506_v43, 0.0 }
 0x393   :  { %v511_v48 = vpack.c.bf16 %v510_v46, %v509_v45 }
 0x394   :  { %v614_v49 = vpop.f32.mrb[16].mxu0 }
 0x395   :  { %v615_v50 = vadd.f32 %v614_v49, %v1776_v14  ;;  %v1557_v51 = vpop.f32.mrb[17].mxu0  ;;  %v513_v52 = vsel %vm199_vm4, %v511_v48, 0 }
 0x396   :  { %1546 = vmatpush3.bf16.msra.mxu1 %v513_v52  ;;  %v617_v53 = vpop.f32.mrb[18].mxu0 }
 0x397   :  { %v618_v54 = vadd.f32 %v617_v53, %v1779_v18  ;;  %v1558_v55 = vpop.f32.mrb[19].mxu0  ;;  %1559 = vmatprep.subr.bf16.mxu1 %v1676_v0  ;;  %v621_v56 = vmax.f32 %v615_v50, 0.0 }
 0x399   :  { %v622_v57 = vmax.f32 %v618_v54, 0.0  ;;  %1548 = vmatmul.mubr.msk.bf16.vlgmr.msra.gmra.mrb[16].mxu1 %vm195_vm5, %v1804_v47 }
 0x39a   :  { %1561 = vmatprep.mubr.msk.bf16.mxu1 %vm1677_vm1, %v1676_v0 }
 0x39b   :  { %v623_v58 = vpack.c.bf16 %v622_v57, %v621_v56 }
 0x39d   :  { %1560 = vmatpush3.bf16.msra.mxu1 %v623_v58 }
 0x39e   :  { %1571 = vmatprep.subr.bf16.mxu1 %v1676_v0 }
 0x3a1   :  { %1562 = vmatmul.mubr.msk.bf16.vlgmr.msra.gmra.mrb[20].mxu1 %vm142_vm3, %v1785_v26 }
 0x3a2   :  { %1572 = vmatpush3.bf16.msra.mxu1 %v1666_v59  ;;  %1575 = vmatprep.mubr.msk.bf16.mxu1 %vm1677_vm1, %v1676_v0 }
 0x3a3   :  { %1573 = vmatprep.subr.bf16.mxu1 %v1676_v0 }
 0x3a6   :  { %1574 = vmatpush3.bf16.msra.mxu1 %v734_v61 }
 0x3a7   :  { %1585 = vmatprep.subr.bf16.mxu1 %v1676_v0 }
 0x3a9   :  { %1576 = vmatmul.mubr.msk.bf16.vlgmr.msra.gmra.mrb[24].mxu1 %vm75_vm2, %v1741_v5 }
 0x3aa   :  { %1587 = vmatprep.mubr.msk.bf16.mxu1 %vm1677_vm1, %v1676_v0 }
 0x46c   :  { %v549_v63 = vpop.f32.mrb[16].mxu1 }
 0x46d   :  { %v550_v1 = vadd.f32 %v549_v63, %v1857_v19  ;;  %v1549_v3 = vpop.f32.mrb[17].mxu1 }
 0x46e   :  { %v552_v4 = vpop.f32.mrb[18].mxu1 }
 0x46f   :  { %v555_v6 = vmax.f32 %v550_v1, 0.0  ;;  %v1550_v7 = vpop.f32.mrb[19].mxu1 }
 0x471   :  { %v562_v8 = vmul.f32 %v560_v2, %v555_v6 }
 0x473   :  { %v563_v9 = vadd.f32 %v562_v8, %v407_v37  ;;  %v1668_v37 = vld [vmem:[%s2058_s0 + $0x3c] sm:$0xff]  }
 0x474   :  { %v658_v10 = vpop.f32.mrb[20].mxu1 }
 0x475   :  { %v659_v11 = vadd.f32 %v658_v10, %v1794_v35  ;;  %v1563_v12 = vpop.f32.mrb[21].mxu1  ;;  %v1670_v10 = vld [vmem:[%s2058_s0 + $0x48] sm:$0xff]  }
 0x476   :  { %v661_v13 = vpop.f32.mrb[22].mxu1 }
 0x477   :  { %v662_v15 = vadd.f32 %v661_v13, %v1797_v39  ;;  %v1564_v16 = vpop.f32.mrb[23].mxu1  ;;  %v665_v17 = vmax.f32 %v659_v11, 0.0  ;;  %v1671_v11 = vld [vmem:[%s2058_s0 + $0x50] ss:$0 sps:$4 sm:$0x33]  }
 0x478   :  { %v1046_v12 = vsel %vm79_vm0, %v1671_v11, 0  ;;  %v1980_v13 = vld [vmem:[%s2065_s1 + $0x4] sm:$0x1] }
 0x479   :  { %v666_v20 = vmax.f32 %v662_v15, 0.0 }
 0x47b   :  { %v667_v24 = vpack.c.bf16 %v666_v20, %v665_v17  ;;  %v872_v17 = vrot.slane %v1980_v13, %v1860_v21 }
 0x47c   :  { %v770_v25 = vpop.f32.mrb[24].mxu1 }
 0x47d   :  { %v771_v27 = vadd.f32 %v770_v25, %v1776_v14  ;;  %v1577_v28 = vpop.f32.mrb[25].mxu1  ;;  %v669_v29 = vsel %vm199_vm4, %v667_v24, 0 }
 0x47e   :  { %1566 = vmatpush3.bf16.msra.mxu0 %v669_v29  ;;  %v773_v30 = vpop.f32.mrb[26].mxu1 }
 0x47f   :  { %v774_v31 = vadd.f32 %v773_v30, %v1779_v18  ;;  %v1578_v32 = vpop.f32.mrb[27].mxu1  ;;  %1579 = vmatprep.subr.bf16.mxu0 %v1676_v0  ;;  %v777_v33 = vmax.f32 %v771_v27, 0.0 }
 0x481   :  { %v778_v34 = vmax.f32 %v774_v31, 0.0  ;;  %1568 = vmatmul.mubr.msk.bf16.vlgmr.msra.gmra.mrb[20].mxu0 %vm195_vm5, %v1804_v47 }
 0x482   :  { %1581 = vmatprep.mubr.msk.bf16.mxu0 %vm1677_vm1, %v1676_v0 }
 0x483   :  { %v779_v36 = vpack.c.bf16 %v778_v34, %v777_v33 }
 0x485   :  { %1580 = vmatpush3.bf16.msra.mxu0 %v779_v36 }
 0x486   :  { %1591 = vmatprep.subr.bf16.mxu0 %v1676_v0 }
 0x489   :  { %1582 = vmatmul.mubr.msk.bf16.vlgmr.msra.gmra.mrb[24].mxu0 %vm142_vm3, %v1785_v26 }
 0x48a   :  { %1592 = vmatpush3.bf16.msra.mxu0 %v1668_v37  ;;  %1595 = vmatprep.mubr.msk.bf16.mxu0 %vm1677_vm1, %v1676_v0 }
 0x48b   :  { %1593 = vmatprep.subr.bf16.mxu0 %v1676_v0 }
 0x48e   :  { %1594 = vmatpush3.bf16.msra.mxu0 %v890_v40 }
 0x48f   :  { %1605 = vmatprep.subr.bf16.mxu0 %v1676_v0 }
 0x491   :  { %1596 = vmatmul.mubr.msk.bf16.vlgmr.msra.gmra.mrb[28].mxu0 %vm75_vm2, %v1741_v5 }
 0x492   :  { %1607 = vmatprep.mubr.msk.bf16.mxu0 %vm1677_vm1, %v1676_v0 }
 0x554   :  { %v705_v42 = vpop.f32.mrb[20].mxu0 }
 0x555   :  { %v706_v43 = vadd.f32 %v705_v42, %v1857_v19  ;;  %v1569_v45 = vpop.f32.mrb[21].mxu0 }
 0x556   :  { %v708_v46 = vpop.f32.mrb[22].mxu0 }
 0x557   :  { %v711_v48 = vmax.f32 %v706_v43, 0.0  ;;  %v1570_v49 = vpop.f32.mrb[23].mxu0 }
 0x559   :  { %v718_v50 = vmul.f32 %v716_v44, %v711_v48 }
 0x55b   :  { %v719_v51 = vadd.f32 %v718_v50, %v563_v9 }
 0x55c   :  { %v814_v52 = vpop.f32.mrb[24].mxu0 }
 0x55d   :  { %v815_v53 = vadd.f32 %v814_v52, %v1794_v35  ;;  %v1583_v54 = vpop.f32.mrb[25].mxu0 }
 0x55e   :  { %v817_v55 = vpop.f32.mrb[26].mxu0  ;;  %v1673_v54 = vld [vmem:[%s2058_s0 + $0x5c] ss:$0 sps:$4 sm:$0x33]  }
 0x55f   :  { %v818_v56 = vadd.f32 %v817_v55, %v1797_v39  ;;  %v1584_v57 = vpop.f32.mrb[27].mxu0  ;;  %v821_v58 = vmax.f32 %v815_v53, 0.0  ;;  %v1672_v53 = vld [vmem:[%s2058_s0 + $0x54] sm:$0xff]   ;;  %v1202_v55 = vsel %vm79_vm0, %v1673_v54, 0 }
 0x561   :  { %v822_v59 = vmax.f32 %v818_v56, 0.0  ;;  %v2016_v56 = vld [vmem:[%s2065_s1 + $0x5] sm:$0x1] }
 0x563   :  { %v823_v60 = vpack.c.bf16 %v822_v59, %v821_v58  ;;  %v1028_v59 = vrot.slane %v2016_v56, %v1860_v21 }
 0x564   :  { %v926_v61 = vpop.f32.mrb[28].mxu0 }
 0x565   :  { %v927_v63 = vadd.f32 %v926_v61, %v1776_v14  ;;  %v1597_v1 = vpop.f32.mrb[29].mxu0  ;;  %v825_v2 = vsel %vm199_vm4, %v823_v60, 0 }
 0x566   :  { %1586 = vmatpush3.bf16.msra.mxu1 %v825_v2  ;;  %v929_v3 = vpop.f32.mrb[30].mxu0 }
 0x567   :  { %v930_v4 = vadd.f32 %v929_v3, %v1779_v18  ;;  %v1598_v6 = vpop.f32.mrb[31].mxu0  ;;  %1599 = vmatprep.subr.bf16.mxu1 %v1676_v0  ;;  %v933_v7 = vmax.f32 %v927_v63, 0.0 }
 0x569   :  { %v934_v8 = vmax.f32 %v930_v4, 0.0  ;;  %1588 = vmatmul.mubr.msk.bf16.vlgmr.msra.gmra.mrb[28].mxu1 %vm195_vm5, %v1804_v47 }
 0x56a   :  { %1601 = vmatprep.mubr.msk.bf16.mxu1 %vm1677_vm1, %v1676_v0 }
 0x56b   :  { %v935_v9 = vpack.c.bf16 %v934_v8, %v933_v7 }
 0x56d   :  { %1600 = vmatpush3.bf16.msra.mxu1 %v935_v9 }
 0x56e   :  { %1611 = vmatprep.subr.bf16.mxu1 %v1676_v0 }
 0x571   :  { %1602 = vmatmul.mubr.msk.bf16.vlgmr.msra.gmra.mrb[32].mxu1 %vm142_vm3, %v1785_v26 }
 0x572   :  { %1612 = vmatpush3.bf16.msra.mxu1 %v1670_v10  ;;  %1615 = vmatprep.mubr.msk.bf16.mxu1 %vm1677_vm1, %v1676_v0 }
 0x573   :  { %1613 = vmatprep.subr.bf16.mxu1 %v1676_v0 }
 0x576   :  { %1614 = vmatpush3.bf16.msra.mxu1 %v1046_v12 }
 0x577   :  { %1625 = vmatprep.subr.bf16.mxu1 %v1676_v0 }
 0x579   :  { %1616 = vmatmul.mubr.msk.bf16.vlgmr.msra.gmra.mrb[36].mxu1 %vm75_vm2, %v1741_v5 }
 0x57a   :  { %1627 = vmatprep.mubr.msk.bf16.mxu1 %vm1677_vm1, %v1676_v0 }
 0x63c   :  { %v861_v15 = vpop.f32.mrb[28].mxu1 }
 0x63d   :  { %v862_v16 = vadd.f32 %v861_v15, %v1857_v19  ;;  %v1589_v20 = vpop.f32.mrb[29].mxu1 }
 0x63e   :  { %v864_v24 = vpop.f32.mrb[30].mxu1 }
 0x63f   :  { %v867_v25 = vmax.f32 %v862_v16, 0.0  ;;  %v1590_v27 = vpop.f32.mrb[31].mxu1 }
 0x641   :  { %v874_v28 = vmul.f32 %v872_v17, %v867_v25 }
 0x643   :  { %v875_v29 = vadd.f32 %v874_v28, %v719_v51 }
 0x644   :  { %v970_v30 = vpop.f32.mrb[32].mxu1 }
 0x645   :  { %v971_v31 = vadd.f32 %v970_v30, %v1794_v35  ;;  %v1603_v32 = vpop.f32.mrb[33].mxu1 }
 0x646   :  { %v973_v33 = vpop.f32.mrb[34].mxu1 }
 0x647   :  { %v974_v34 = vadd.f32 %v973_v33, %v1797_v39  ;;  %v1604_v36 = vpop.f32.mrb[35].mxu1  ;;  %v977_v37 = vmax.f32 %v971_v31, 0.0 }
 0x649   :  { %v978_v38 = vmax.f32 %v974_v34, 0.0 }
 0x64b   :  { %v979_v40 = vpack.c.bf16 %v978_v38, %v977_v37 }
 0x64c   :  { %v1082_v42 = vpop.f32.mrb[36].mxu1 }
 0x64d   :  { %v1083_v43 = vadd.f32 %v1082_v42, %v1776_v14  ;;  %v1617_v44 = vpop.f32.mrb[37].mxu1  ;;  %v981_v45 = vsel %vm199_vm4, %v979_v40, 0 }
 0x64e   :  { %1606 = vmatpush3.bf16.msra.mxu0 %v981_v45  ;;  %v1085_v46 = vpop.f32.mrb[38].mxu1 }
 0x64f   :  { %v1086_v48 = vadd.f32 %v1085_v46, %v1779_v18  ;;  %v1618_v49 = vpop.f32.mrb[39].mxu1  ;;  %1619 = vmatprep.subr.bf16.mxu0 %v1676_v0  ;;  %v1089_v50 = vmax.f32 %v1083_v43, 0.0 }
 0x651   :  { %v1090_v51 = vmax.f32 %v1086_v48, 0.0  ;;  %1608 = vmatmul.mubr.msk.bf16.vlgmr.msra.gmra.mrb[32].mxu0 %vm195_vm5, %v1804_v47 }
 0x652   :  { %1621 = vmatprep.mubr.msk.bf16.mxu0 %vm1677_vm1, %v1676_v0 }
 0x653   :  { %v1091_v52 = vpack.c.bf16 %v1090_v51, %v1089_v50  ;;  %v1345_v51 = vsel %vm1344_vm6, %v1865_v22, 0.0 }
 0x655   :  { %1620 = vmatpush3.bf16.msra.mxu0 %v1091_v52  ;;  %v1346_v52 = vsel %vm1344_vm6, %v1870_v23, 0.0 }
 0x656   :  { %1631 = vmatprep.subr.bf16.mxu0 %v1676_v0 }
 0x659   :  { %1622 = vmatmul.mubr.msk.bf16.vlgmr.msra.gmra.mrb[36].mxu0 %vm142_vm3, %v1785_v26 }
 0x65a   :  { %1632 = vmatpush3.bf16.msra.mxu0 %v1672_v53  ;;  %1635 = vmatprep.mubr.msk.bf16.mxu0 %vm1677_vm1, %v1676_v0  ;;  %v1348_v53 = vsel %vm1344_vm6, %v1908_v62, 0.0 }
 0x65b   :  { %1633 = vmatprep.subr.bf16.mxu0 %v1676_v0 }
 0x65e   :  { %1634 = vmatpush3.bf16.msra.mxu0 %v1202_v55 }
 0x65f   :  { %1645 = vmatprep.subr.bf16.mxu0 %v1676_v0 }
 0x661   :  { %1636 = vmatmul.mubr.msk.bf16.vlgmr.msra.gmra.mrb[40].mxu0 %vm75_vm2, %v1741_v5 }
 0x662   :  { %1647 = vmatprep.mubr.msk.bf16.mxu0 %vm1677_vm1, %v1676_v0 }
 0x724   :  { %v1017_v57 = vpop.f32.mrb[32].mxu0 }
 0x725   :  { %v1018_v58 = vadd.f32 %v1017_v57, %v1857_v19  ;;  %v1609_v60 = vpop.f32.mrb[33].mxu0  ;;  %v1352_v57 = vsel %vm1344_vm6, %v1980_v13, 0.0 }
 0x726   :  { %v1020_v61 = vpop.f32.mrb[34].mxu0 }
 0x727   :  { %v1023_v63 = vmax.f32 %v1018_v58, 0.0  ;;  %v1610_v1 = vpop.f32.mrb[35].mxu0 }
 0x729   :  { %v1030_v2 = vmul.f32 %v1028_v59, %v1023_v63  ;;  %v1354_v59 = vsel %vm1344_vm6, %v2016_v56, 0.0 }
 0x72b   :  { %v1031_v5 = vadd.f32 %v1030_v2, %v875_v29 }
 0x72c   :  { %v1126_v3 = vpop.f32.mrb[36].mxu0 }
 0x72d   :  { %v1127_v4 = vadd.f32 %v1126_v3, %v1794_v35  ;;  %v1623_v6 = vpop.f32.mrb[37].mxu0 }
 0x72e   :  { %v1129_v7 = vpop.f32.mrb[38].mxu0 }
 0x72f   :  { %v1130_v8 = vadd.f32 %v1129_v7, %v1797_v39  ;;  %v1624_v9 = vpop.f32.mrb[39].mxu0  ;;  %v1133_v10 = vmax.f32 %v1127_v4, 0.0 }
 0x731   :  { %v1134_v11 = vmax.f32 %v1130_v8, 0.0 }
 0x733   :  { %v1135_v12 = vpack.c.bf16 %v1134_v11, %v1133_v10 }
 0x734   :  { %v1238_v15 = vpop.f32.mrb[40].mxu0 }
 0x735   :  { %v1239_v16 = vadd.f32 %v1238_v15, %v1776_v14  ;;  %v1637_v17 = vpop.f32.mrb[41].mxu0  ;;  %v1137_v20 = vsel %vm199_vm4, %v1135_v12, 0  ;;  %v46_v14 = vld [vmem:[%s2065_s1 + $0x6] sm:$0x1] }
 0x736   :  { %1626 = vmatpush3.bf16.msra.mxu1 %v1137_v20  ;;  %v1241_v24 = vpop.f32.mrb[42].mxu0  ;;  %v1184_v32 = vrot.slane %v46_v14, %v1860_v21  ;;  %v1356_v61 = vsel %vm1344_vm6, %v46_v14, 0.0 }
 0x737   :  { %v1242_v25 = vadd.f32 %v1241_v24, %v1779_v18  ;;  %v1638_v27 = vpop.f32.mrb[43].mxu0  ;;  %1639 = vmatprep.subr.bf16.mxu1 %v1676_v0  ;;  %v1245_v28 = vmax.f32 %v1239_v16, 0.0 }
 0x739   :  { %v1246_v29 = vmax.f32 %v1242_v25, 0.0  ;;  %1628 = vmatmul.mubr.msk.bf16.vlgmr.msra.gmra.mrb[40].mxu1 %vm195_vm5, %v1804_v47 }
 0x73a   :  { %1641 = vmatprep.mubr.msk.bf16.mxu1 %vm1677_vm1, %v1676_v0 }
 0x73b   :  { %v1247_v30 = vpack.c.bf16 %v1246_v29, %v1245_v28 }
 0x73d   :  { %1640 = vmatpush3.bf16.msra.mxu1 %v1247_v30 }
 0x741   :  { %1642 = vmatmul.mubr.msk.bf16.vlgmr.msra.gmra.mrb[44].mxu1 %vm142_vm3, %v1785_v26 }
 0x80c   :  { %v1173_v18 = vpop.f32.mrb[40].mxu1 }
 0x80d   :  { %v1174_v31 = vadd.f32 %v1173_v18, %v1857_v19  ;;  %v1629_v33 = vpop.f32.mrb[41].mxu1 }
 0x80e   :  { %v1176_v34 = vpop.f32.mrb[42].mxu1 }
 0x80f   :  { %v1179_v36 = vmax.f32 %v1174_v31, 0.0  ;;  %v1630_v37 = vpop.f32.mrb[43].mxu1 }
 0x811   :  { %v1186_v38 = vmul.f32 %v1184_v32, %v1179_v36 }
 0x813   :  { %v1187_v0 = vadd.f32 %v1186_v38, %v1031_v5 }
 0x814   :  { %v1282_v40 = vpop.f32.mrb[44].mxu1 }
 0x815   :  { %v1283_v42 = vadd.f32 %v1282_v40, %v1794_v35  ;;  %v1643_v43 = vpop.f32.mrb[45].mxu1  ;;  %v1347_v35 = vadd.f32 %v1346_v52, %v1345_v51 }
 0x816   :  { %v1285_v26 = vpop.f32.mrb[46].mxu1 }
 0x817   :  { %v1286_v44 = vadd.f32 %v1285_v26, %v1797_v39  ;;  %v1644_v45 = vpop.f32.mrb[47].mxu1  ;;  %v1289_v46 = vmax.f32 %v1283_v42, 0.0  ;;  %v1349_v54 = vadd.f32 %v1348_v53, %v1347_v35  ;;  %v1350_v39 = vsel %vm1344_vm6, %v1944_v41, 0.0 }
 0x819   :  { %v1290_v48 = vmax.f32 %v1286_v44, 0.0  ;;  %v1351_v55 = vadd.f32 %v1350_v39, %v1349_v54 }
 0x81b   :  { %v1291_v49 = vpack.c.bf16 %v1290_v48, %v1289_v46  ;;  %v1353_v58 = vadd.f32 %v1352_v57, %v1351_v55 }
 0x81d   :  { %v1293_v50 = vsel %vm199_vm4, %v1291_v49, 0  ;;  %v1355_v60 = vadd.f32 %v1354_v59, %v1353_v58 }
 0x81e   :  { %1646 = vmatpush3.bf16.msra.mxu0 %v1293_v50 }
 0x81f   :  { %v1357_v22 = vadd.f32 %v1356_v61, %v1355_v60 }
 0x821   :  { %1648 = vmatmul.mubr.msk.bf16.vlgmr.msra.gmra.mrb[44].mxu0 %vm195_vm5, %v1804_v47  ;;  %v47_v47 = vld [vmem:[%s2065_s1 + $0x7] sm:$0x1] }
 0x822   :  { %v1358_v23 = vsel %vm1344_vm6, %v47_v47, 0.0  ;;  %v1340_v2 = vrot.slane %v47_v47, %v1860_v21 }
 0x823   :  { %v1359_v63 = vadd.f32 %v1358_v23, %v1357_v22 }
 0x825   :  { %v1360_v1 = vadd.f32 0.001, %v1359_v63 }
 0x827   :  { %1674 = vrcp.f32 %v1360_v1 }
 0x831   :  { %v1675_v5 = vpop.eup %1674 }
 0x832   :  { %v1365_v7 = vrot.slane %v1675_v5, %v1860_v21 }
 0x8f4   :  { %v1329_v62 = vpop.f32.mrb[44].mxu0 }
 0x8f5   :  { %v1330_v41 = vadd.f32 %v1329_v62, %v1857_v19  ;;  %v1649_v13 = vpop.f32.mrb[45].mxu0 }
 0x8f6   :  { %v1332_v3 = vpop.f32.mrb[46].mxu0 }
 0x8f7   :  { %v1335_v56 = vmax.f32 %v1330_v41, 0.0  ;;  %v1650_v4 = vpop.f32.mrb[47].mxu0 }
 0x8f9   :  { %v1342_v6 = vmul.f32 %v1340_v2, %v1335_v56 }
 0x8fb   :  { %v1343_v8 = vadd.f32 %v1342_v6, %v1187_v0 }
 0x8fd   :  { %v1366_v9 = vmul.f32 %v1365_v7, %v1343_v8 }
 0x8ff   :  { %1367 = vst [vmem:[%s2066_s8] sm:$0xf] %v1366_v9 }

</bundles_post_ra>
